<compile_context>
chip_gen: v7x
topology: tpu7x:2x2x1
jax: 0.10.0
libtpu: 0.0.40
codegen_flags: <defaults>
</compile_context>

<pallas_src>
import functools

import jax
import jax.numpy as jnp
from jax.experimental import pallas as pl
from jax.experimental.pallas import tpu as pltpu


def _round_up(x, m):
    return ((x + m - 1) // m) * m


def _ce_loss_kernel(packed_ref, out_ref, acc_ref, *, w0_over_n, w1_over_n):
    """One sublane/lane-dense tile of the lw-weighted 2-class CE sum.

    packed_ref: (24, TN) f32 — rows [0:8)  = logit1 - logit0,
                               rows [8:16) = lw (0 on padded samples),
                               rows [16:24)= label as 0.0 / 1.0.
    out_ref:    (1, 8, 128) f32 — per-half result; every element holds the
                                  same scalar partial sum.
    acc_ref:    (8, TN) f32 VMEM scratch — running element-wise accumulator.
    """
    step = pl.program_id(1)

    @pl.when(step == 0)
    def _init():
        acc_ref[...] = jnp.zeros_like(acc_ref)

    d = packed_ref[0:8, :]            # logit1 - logit0
    lw = packed_ref[8:16, :]          # loss weights (0 -> no contribution)
    label = packed_ref[16:24, :]      # 0.0 / 1.0  (CrossEntropyLoss requires {0,1})

    # 2-class cross entropy:  -logp[y] = softplus(d) if y == 0 else softplus(-d)
    z = d * (1.0 - 2.0 * label)                                   # arithmetic select
    softplus_z = jnp.maximum(z, 0.0) + jnp.log1p(jnp.exp(-jnp.abs(z)))
    # class weight with the 1/N normalization already folded in
    class_w = w0_over_n + (w1_over_n - w0_over_n) * label

    acc_ref[...] += class_w * lw * softplus_z                     # dense VPU add only

    @pl.when(step == pl.num_programs(1) - 1)
    def _finalize():
        s = jnp.sum(acc_ref[...])                                 # single epilogue reduce
        out_ref[...] = jnp.full(out_ref.shape, s, dtype=out_ref.dtype)


def loss_wrapper_forward(thepred, cell_gt, cell_lw, p0, p1, tile_lanes=32768):
    """Pallas equivalent of LossWrapper(p0, p1).forward(thepred, (cell_gt, cell_lw))."""
    # torch.squeeze semantics (squeeze *all* singleton dims).
    # TODO(synk): like torch.squeeze, this also drops the batch dim when N == 1.
    logits = jnp.squeeze(thepred).astype(jnp.float32)   # (N, 2)
    labels = jnp.squeeze(cell_gt)                       # (N,)  values in {0, 1}
    lw = jnp.squeeze(cell_lw).astype(jnp.float32)       # (N,)

    n, c = logits.shape
    assert c == 2, "LossWrapper is a 2-class loss"

    # lane tile: multiple of 128, clamped to what the input actually needs
    lanes_needed = _round_up(pl.cdiv(n, 8), 128)
    tn = min(_round_up(int(tile_lanes), 128), lanes_needed)
    # pad the lane extent to a multiple of 2*tn so the reduction splits evenly
    # across the 2-way "parallel" (TensorCore) grid axis.
    m_pad = _round_up(pl.cdiv(n, 8), 2 * tn)
    t_half = m_pad // (2 * tn)
    total = 8 * m_pad

    # Single fused packing pass: stack -> pad -> free row-major reshape into
    # the sublane-dense (24, m_pad) slab.  Padded samples get lw == 0.
    d = logits[:, 1] - logits[:, 0]
    rows = jnp.stack([d, lw, labels.astype(jnp.float32)], axis=0)       # (3, N)
    packed = jnp.pad(rows, ((0, 0), (0, total - n))).reshape(24, m_pad)

    # NOTE: divisor is N (reduce=False then sum/N), NOT the sum of selected
    # class weights (that would be CrossEntropyLoss(reduction='mean')).
    w0_over_n = (1.0 / float(p0)) / float(n)
    w1_over_n = (1.0 / float(p1)) / float(n)

    kernel = functools.partial(
        _ce_loss_kernel, w0_over_n=w0_over_n, w1_over_n=w1_over_n)

    out = pl.pallas_call(
        kernel,
        out_shape=jax.ShapeDtypeStruct((2, 8, 128), jnp.float32),
        grid=(2, t_half),
        in_specs=[
            pl.BlockSpec((24, tn), lambda h, i: (0, h * t_half + i)),
        ],
        out_specs=pl.BlockSpec((1, 8, 128), lambda h, i: (h, 0, 0)),
        scratch_shapes=[pltpu.VMEM((8, tn), jnp.float32)],
        compiler_params=pltpu.CompilerParams(
            dimension_semantics=("parallel", "arbitrary")),
    )(packed)

    return out[0, 0, 0] + out[1, 0, 0]


def _reference(thepred, cell_gt, cell_lw, p0, p1):
    """Pure-JAX reference for sanity checking."""
    logits = jnp.squeeze(thepred).astype(jnp.float32)
    labels = jnp.squeeze(cell_gt).astype(jnp.int32)
    lw = jnp.squeeze(cell_lw).astype(jnp.float32)
    w = jnp.array([1.0 / p0, 1.0 / p1], dtype=jnp.float32)
    logp = jax.nn.log_softmax(logits, axis=-1)
    picked = jnp.take_along_axis(logp, labels[:, None], axis=-1)[:, 0]
    per_sample = -w[labels] * picked
    return jnp.sum(per_sample * lw) / logits.shape[0]


if __name__ == "__main__":
    key = jax.random.PRNGKey(0)
    k1, k2, k3, k4, k5, k6 = jax.random.split(key, 6)

    p0, p1 = 3.0, 7.0     # class-frequency parameters from __init__
    C = 2

    # small case: batch of 8, trailing singleton dims squeezed in forward
    N = 8
    thepred = jax.random.normal(k1, (N, C, 1, 1), dtype=jnp.float32)
    cell_gt = jax.random.randint(k2, (N, 1), 0, C, dtype=jnp.int32)
    cell_lw = jax.random.uniform(k3, (N, 1), dtype=jnp.float32)

    loss = jax.block_until_ready(loss_wrapper_forward(thepred, cell_gt, cell_lw, p0, p1))
    ref = _reference(thepred, cell_gt, cell_lw, p0, p1)
    assert jnp.allclose(loss, ref, rtol=1e-5, atol=2e-6), (loss, ref)

    # larger case exercising multi-step accumulation on both grid halves
    # (tile_lanes=128 -> grid (2, 2): init / accumulate / epilogue paths all hit)
    N2 = 4000
    thepred2 = jax.random.normal(k4, (N2, C, 1, 1), dtype=jnp.float32)
    cell_gt2 = jax.random.randint(k5, (N2, 1), 0, C, dtype=jnp.int32)
    cell_lw2 = jax.random.uniform(k6, (N2, 1), dtype=jnp.float32)

    loss2 = jax.block_until_ready(
        loss_wrapper_forward(thepred2, cell_gt2, cell_lw2, p0, p1, tile_lanes=128))
    ref2 = _reference(thepred2, cell_gt2, cell_lw2, p0, p1)
    assert jnp.allclose(loss2, ref2, rtol=1e-5, atol=2e-6), (loss2, ref2)

    # same data through the default (large-tile) path
    loss3 = jax.block_until_ready(
        loss_wrapper_forward(thepred2, cell_gt2, cell_lw2, p0, p1))
    assert jnp.allclose(loss3, ref2, rtol=1e-5, atol=2e-6), (loss3, ref2)

    print("KERNEL_OK")
</pallas_src>

<mosaic_0001>
module attributes {stable_mosaic.version = 11 : i64} {
  func.func @_ce_loss_kernel(%arg0: i32, %arg1: i32, %arg2: memref<24x128xf32, #tpu.memory_space<vmem>>, %arg3: memref<1x8x128xf32, #tpu.memory_space<vmem>>, %arg4: memref<8x128xf32, #tpu.memory_space<vmem>>) attributes {dimension_semantics = [#tpu.dimension_semantics<parallel>, #tpu.dimension_semantics<arbitrary>], iteration_bounds = array<i64: 2, 1>, scalar_prefetch = 0 : i64, scratch_operands = 1 : i64, tpu.core_type = #tpu.core_type<tc>, window_params = [{transform_indices = @transform_0, window_bounds = array<i64: 24, 128>}, {transform_indices = @transform_1, window_bounds = array<i64: 1, 8, 128>}]} {
    %c0_i32 = arith.constant 0 : i32
    %0 = arith.cmpi eq, %arg1, %c0_i32 : i32
    %1 = arith.extui %0 : i1 to i32
    %c0_i32_0 = arith.constant 0 : i32
    %2 = arith.cmpi ne, %1, %c0_i32_0 : i32
    scf.if %2 {
      %cst_15 = arith.constant 0.000000e+00 : f32
      %31 = vector.broadcast %cst_15 : f32 to vector<8x128xf32>
      %c0_16 = arith.constant 0 : index
      %c0_17 = arith.constant 0 : index
      %32 = vector.load %arg4[%c0_16, %c0_17] : memref<8x128xf32, #tpu.memory_space<vmem>>, vector<8x128xf32>
      tpu.vector_store %arg4[%c0_16, %c0_17], %31 {strides = array<i32>} : memref<8x128xf32, #tpu.memory_space<vmem>>, vector<8x128xf32>,
    } else {
    }
    %c0 = arith.constant 0 : index
    %c0_1 = arith.constant 0 : index
    %3 = vector.load %arg2[%c0, %c0_1] : memref<24x128xf32, #tpu.memory_space<vmem>>, vector<8x128xf32>
    %c8 = arith.constant 8 : index
    %c0_2 = arith.constant 0 : index
    %4 = vector.load %arg2[%c8, %c0_2] : memref<24x128xf32, #tpu.memory_space<vmem>>, vector<8x128xf32>
    %c16 = arith.constant 16 : index
    %c0_3 = arith.constant 0 : index
    %5 = vector.load %arg2[%c16, %c0_3] : memref<24x128xf32, #tpu.memory_space<vmem>>, vector<8x128xf32>
    %cst = arith.constant 2.000000e+00 : f32
    %6 = vector.broadcast %cst : f32 to vector<8x128xf32>
    %7 = arith.mulf %6, %5 : vector<8x128xf32>
    %cst_4 = arith.constant 1.000000e+00 : f32
    %8 = vector.broadcast %cst_4 : f32 to vector<8x128xf32>
    %9 = arith.subf %8, %7 : vector<8x128xf32>
    %10 = arith.mulf %3, %9 : vector<8x128xf32>
    %cst_5 = arith.constant 0.000000e+00 : f32
    %11 = vector.broadcast %cst_5 : f32 to vector<8x128xf32>
    %12 = arith.maximumf %10, %11 : vector<8x128xf32>
    %13 = math.absf %10 : vector<8x128xf32>
    %cst_6 = arith.constant 0.000000e+00 : f32
    %14 = vector.broadcast %cst_6 : f32 to vector<8x128xf32>
    %15 = arith.subf %14, %13 : vector<8x128xf32>
    %16 = math.exp %15 : vector<8x128xf32>
    %17 = math.log1p %16 : vector<8x128xf32>
    %18 = arith.addf %12, %17 : vector<8x128xf32>
    %cst_7 = arith.constant -0.0238095243 : f32
    %19 = vector.broadcast %cst_7 : f32 to vector<8x128xf32>
    %20 = arith.mulf %19, %5 : vector<8x128xf32>
    %cst_8 = arith.constant 0.0416666679 : f32
    %21 = vector.broadcast %cst_8 : f32 to vector<8x128xf32>
    %22 = arith.addf %21, %20 : vector<8x128xf32>
    %c0_9 = arith.constant 0 : index
    %c0_10 = arith.constant 0 : index
    %23 = vector.load %arg4[%c0_9, %c0_10] : memref<8x128xf32, #tpu.memory_space<vmem>>, vector<8x128xf32>
    %24 = arith.mulf %22, %4 : vector<8x128xf32>
    %25 = arith.mulf %24, %18 : vector<8x128xf32>
    %26 = arith.addf %23, %25 : vector<8x128xf32>
    %c0_11 = arith.constant 0 : index
    %c0_12 = arith.constant 0 : index
    %27 = vector.load %arg4[%c0_11, %c0_12] : memref<8x128xf32, #tpu.memory_space<vmem>>, vector<8x128xf32>
    tpu.vector_store %arg4[%c0_11, %c0_12], %26 {strides = array<i32>} : memref<8x128xf32, #tpu.memory_space<vmem>>, vector<8x128xf32>,
    %c0_i32_13 = arith.constant 0 : i32
    %28 = arith.cmpi eq, %arg1, %c0_i32_13 : i32
    %29 = arith.extui %28 : i1 to i32
    %c0_i32_14 = arith.constant 0 : i32
    %30 = arith.cmpi ne, %29, %c0_i32_14 : i32
    scf.if %30 {
      %c0_15 = arith.constant 0 : index
      %c0_16 = arith.constant 0 : index
      %31 = vector.load %arg4[%c0_15, %c0_16] : memref<8x128xf32, #tpu.memory_space<vmem>>, vector<8x128xf32>
      %32 = vector.shape_cast %31 : vector<8x128xf32> to vector<1x8x128xf32>
      %cst_17 = arith.constant dense<0.000000e+00> : vector<1xf32>
      %33 = vector.multi_reduction <add>, %32, %cst_17 [1, 2] : vector<1x8x128xf32> to vector<1xf32>
      %34 = vector.shape_cast %33 : vector<1xf32> to vector<1x1x1xf32>
      %35 = vector.extract %34[0, 0, 0] : f32 from vector<1x1x1xf32>
      %36 = vector.broadcast %35 : f32 to vector<1x8x128xf32>
      %c0_18 = arith.constant 0 : index
      %c0_19 = arith.constant 0 : index
      %c0_20 = arith.constant 0 : index
      %37 = vector.load %arg3[%c0_18, %c0_19, %c0_20] : memref<1x8x128xf32, #tpu.memory_space<vmem>>, vector<1x8x128xf32>
      tpu.vector_store %arg3[%c0_18, %c0_19, %c0_20], %36 {strides = array<i32>} : memref<1x8x128xf32, #tpu.memory_space<vmem>>, vector<1x8x128xf32>,
    } else {
    }
    return
  }
  func.func @transform_0(%arg0: i32, %arg1: i32) -> (i32, i32) {
    %c1_i32 = arith.constant 1 : i32
    %0 = arith.muli %arg0, %c1_i32 : i32
    %1 = arith.addi %0, %arg1 : i32
    %c0_i32 = arith.constant 0 : i32
    %c0_i32_0 = arith.constant 0 : i32
    return %c0_i32, %1 : i32, i32
  }
  func.func @transform_1(%arg0: i32, %arg1: i32) -> (i32, i32, i32) {
    %c0_i32 = arith.constant 0 : i32
    %c0_i32_0 = arith.constant 0 : i32
    %c0_i32_1 = arith.constant 0 : i32
    return %arg0, %c0_i32, %c0_i32_0 : i32, i32, i32
  }
}

</mosaic_0001>

<bundles_post_ra>
// kernel: tpu_custom_call.1
= control target key start
LH: loop header
LB: loop body
LE: loop exit
PB: predicated region body
PF: predicated region fallthrough
CT: control target
= control target key end

     0   :  { %6 = vsyncpa [#allocation4], 0  ;;  %s676_s0 = inlined_call_operand.hbm [shape: f32[24,256], index: 0, kind: input, shape index: {}]   ;;  %s677_s1 = inlined_call_operand.hbm [shape: f32[2,8,128], index: 1, kind: output, shape index: {}]  }
   0x1   :  { %8 = vsyncpa [#allocation4 + $0x1], 0 }
   0x2   :  { %9 = vsyncpa [#allocation5], 0 }
   0x3   :  { %11 = vsyncpa [#allocation5 + $0x1], 0  ;;  %s504_s6 = smov 0   ;;  %s506_s7 = smov 0  }
   0x4   :  { %s508_s8 = smov 0   ;;  %s510_s9 = smov 0  }
   0x5   :  { %s512_s10 = smov 0   ;;  %s514_s11 = smov 0  }
   0x6 LB: > { %s291_s12 = sadd.s32 4294967295, %s487_s11   ;;  %s292_s13 = sadd.s32 4294967294, %s487_s11   ;;  %s487_s11 = sphi %s514_s11, %s17_s11   ;;  %s483_s10 = sphi %s512_s10, %s691_s10   ;;  %s479_s9 = sphi %s510_s9, %s690_s9   ;;  %s475_s8 = sphi %s508_s8, %s689_s8   ;;  %s471_s7 = sphi %s506_s7, %s688_s7   ;;  %s467_s6 = sphi %s504_s6, %s687_s6  }
   0x7   : > { %s29_s14 = sadd.s32 1, %s483_s10  ;;  %s38_s15 = sadd.s32 1, %s475_s8 }
   0x8   : > { %p31_p0 = scmp.ge.s32.totalorder %s29_s14, 2  ;;  %p45_p1 = scmp.ne.s32.totalorder %s475_s8, %s471_s7 }
   0x9   : > { %p46_p2 = scmp.eq.s32.totalorder %s487_s11, 0  ;;  %p51_p3 = scmp.ne.s32.totalorder %s471_s7, %s467_s6 }
   0xa   : > { %s693_s14 = smov (%p31_p0, %s29_s14), 0  ;;  %p52_p5 = scmp.eq.s32.totalorder %s291_s12, 0 }
   0xb   : > { %p545_p4 = por %p46_p2, %p45_p1  ;;  %s35_s17 = ssub.s32 %s483_s10, %s693_s14 }
   0xc   : > { %p75_p6 = scmp.eq.s32.totalorder %s291_s12, 1  ;;  %p36_p7 = scmp.eq.s32.totalorder %s35_s17, 0 }
   0xd   : > { %p551_p8 = por %p52_p5, %p51_p3  ;;  %p81_p10 = scmp.eq.s32.totalorder %s292_s13, 1 }
   0xe   : > { %p555_p9 = por %p75_p6, %p45_p1  ;;  %p318_p13 = scmp.lt.s32.totalorder %s487_s11, 2 }
   0xf   : > { %s560_s20 = scalar_select %p36_p7, %s475_s8, %s38_s15  }
  0x10   : > { %s681_s19 = scalar_select %p555_p9, 1, 0 }
  0x11   : > { %p562_p11 = por %p81_p10, %p51_p3  ;;  %s101_s22 = sand.u32 1, %s475_s8  }
  0x12   : > { %s302_s23 = smul.u32 24, %s101_s22  ;;  %s295_s24 = sshll.u32 %s483_s10, 7 }
  0x13   : > { %s682_s21 = scalar_select %p562_p11, 1, 0 }
  0x14   : > { %p572_p0 = pnand %p318_p13, %p545_p4  ;;  %s579_s28 = scalar_lea.hbm %s676_s0, %s295_s24 }
  0x15   : > { %s105_s29 = scalar_lea.vmem [#allocation3], %s302_s23  ;;  %s583_s2 = scalar_lea.sflag [#allocation4], %s101_s22 }
  0x16   : > { %s112_s30 = sshll.u32 %s105_s29, 4  ;;  %s375_s3 = scalar_lea.hbm %s579_s28, 384  ;;  %s581_s30 = int_to_ptr.vmem [resolvable:$true] %s112_s30 }
  0x17   : > { %p376_p1 = scmp.ne.s32.totalorder %s579_s28, %s375_s3  ;;  %p377_p2 = pneg %p572_p0 }
  0x18   : > { %s380_s12 = scalar_lea.hbm %s676_s0, 768  ;;  %p381_p5 = scmp.lt.u32.totalorder %s579_s28, %s676_s0 }
  0x19   : > { %p378_p3 = pnand %p377_p2, %p376_p1  ;;  %p382_p6 = scmp.lt.u32.totalorder %s380_s12, %s375_s3 }
  0x1a   : > { %p384_p10 = scmp.lt.u32.totalorder %s375_s3, %s579_s28 }
  0x1b   : > { %p379_p4 = pneg %p378_p3  ;;  %p383_p7 = por %p382_p6, %p381_p5 }
  0x1d   : > { %p385_p13 = por %p384_p10, %p383_p7 }
  0x1f   : > { %p386_p12 = pnand %p385_p13, %p379_p4 }
  0x21   : > { %389 = shalt.err (!%p386_p12)
}
  0x22   : > { %s390_s16 = scalar_lea.vmem %s581_s30, 384  ;;  %s489_s17 = smov [#allocation3]  }
  0x23   : > { %p391_p1 = scmp.ne.s32.totalorder %s581_s30, %s390_s16  ;;  %s395_s22 = sshll.u32 %s489_s17, 4  ;;  %s396_s22 = int_to_ptr.vmem [resolvable:$false] %s395_s22 }
  0x24   : > { %s397_s23 = scalar_lea.vmem %s396_s22, 768  ;;  %p398_p9 = scmp.lt.s32.totalorder %s581_s30, %s396_s22 }
  0x25   : > { %p393_p3 = pnand %p391_p1, %p377_p2  ;;  %p399_p5 = scmp.lt.s32.totalorder %s397_s23, %s390_s16 }
  0x27   : > { %p394_p11 = pneg %p393_p3  ;;  %p400_p6 = por %p399_p5, %p398_p9 }
  0x29   : > { %p401_p7 = pnand %p400_p6, %p394_p11 }
  0x2b   : > { %404 = shalt.err (!%p401_p7)
}
  0x2c   : > { %s490_s24 = smov 256   ;;  %s491_s26 = smov 128  }
  0x2d   : > { %s492_s27 = smov 8   ;;  %p296_p12 = scmp.ge.s32.totalorder %s487_s11, 1 }
  0x2e   : > { %313 = dma.hbm_to_vmem [thread:$0]  (!%p572_p0), %s579_s28, 384, %s581_s30, %s583_s2, %s490_s24, %s491_s26, %s492_s27  }
  0x2f   : > { %p120_p2 = scmp.lt.s32.totalorder %s487_s11, 3 }
  0x31   : > { %p121_p4 = pnand %p296_p12, %p120_p2 }
  0x32   : > { %s614_s29 = sand.u32 (!%p121_p4), 1, %s471_s7  }
  0x33   : > { %124 = sbr.rel (%p121_p4) target bundleno = 322 (0x142), region = 24  ;;  %s127_s4 = scalar_lea.sflag (!%p121_p4), [#allocation4], %s614_s29 }
  0x34   : > { %s303_s3 = smul.u32 (!%p121_p4), 24, %s614_s29 }
  0x36   : > { %s130_s5 = scalar_lea.vmem (!%p121_p4), [#allocation3], %s303_s3 }
  0x3a   : > { %458 = dma.done.wait (%p551_p8), %s127_s4, 384  }
  0x3b   : > { %460 = vsyncadd (%p551_p8), %s127_s4, 4294966912  ;;  %v157_v0 = vld [vmem:[%s130_s5 + $0x10] sm:$0xff]  ;;  %v155_v2 = vld [vmem:[%s130_s5] sm:$0xff]  ;;  %s297_s18 = sshll.u32 %s614_s29, 3  ;;  %s299_s30 = sshll.u32 %s479_s9, 7 }
  0x3c   : > { %v158_v1 = vmul.f32 2.0, %v157_v0  ;;  %v176_v11 = vmul.f32 -0.023809524, %v157_v0  ;;  %v156_v15 = vld [vmem:[%s130_s5 + $0x8] sm:$0xff]  ;;  %s148_s25 = scalar_lea.vmem [#allocation6], %s297_s18  ;;  %s629_s15 = scalar_lea.hbm %s677_s1, %s299_s30 }
  0x3d   : > { %s212_s28 = sshll.u32 %s148_s25, 4  ;;  %s199_s16 = scalar_lea.sflag [#allocation5], %s614_s29  ;;  %s624_s28 = int_to_ptr.vmem [resolvable:$true] %s212_s28 }
  0x3e   : > { %v159_v3 = vsub.f32 1.0, %v158_v1  ;;  %v177_v14 = vadd.f32 0.041666668, %v176_v11  ;;  %s405_s17 = scalar_lea.vmem %s624_s28, 128  ;;  %p684_p9 = scmp.ne.s32.totalorder %s681_s19, 0 }
  0x3f   : > { %p406_p8 = scmp.ne.s32.totalorder %s624_s28, %s405_s17  ;;  %s493_s9 = smov [#allocation6]  }
  0x40   : > { %v160_v4 = vmul.f32 %v159_v3, %v155_v2  ;;  %v179_v20 = vmul.f32 %v177_v14, %v156_v15  ;;  %s409_s22 = sshll.u32 %s493_s9, 4  ;;  %s410_s22 = int_to_ptr.vmem [resolvable:$false] %s409_s22 }
  0x41   : > { %p407_p11 = pnand %p406_p8, %p684_p9  ;;  %s411_s23 = scalar_lea.vmem %s410_s22, 256 }
  0x42   : > { %v162_v5 = vand.u32 2147483647, %v160_v4  ;;  %v161_v18 = vmax.f32 %v160_v4, 0.0  ;;  %p412_p10 = scmp.lt.s32.totalorder %s624_s28, %s410_s22  ;;  %p413_p13 = scmp.lt.s32.totalorder %s411_s23, %s405_s17 }
  0x43   : > { %p408_p0 = pneg %p407_p11 }
  0x44   : > { %v163_v6 = vsub.f32 0.0, %v162_v5  ;;  %p414_p1 = por %p413_p13, %p412_p10 }
  0x46   : > { %v164_v7 = vmul.f32 1.442695, %v163_v6  ;;  %p415_p3 = pnand %p414_p1, %p408_p0 }
  0x48   : > { %371 = vpow2.f32 %v164_v7 }
  0x52   : > { %v372_v8 = vpop.eup %371 }
  0x53   : > { %v166_v9 = vadd.f32 1.0, %v372_v8  ;;  %v169_v10 = vmul.f32 -0.5, %v372_v8  ;;  %v172_v13 = vand.u32 2147483647, %v372_v8 }
  0x55   : > { %373 = vlog2.f32 %v166_v9  ;;  %v170_v12 = vadd.f32 1.0, %v169_v10  ;;  %vm173_vm0 = vcmp.lt.f32.partialorder %v172_v13, 0.0004427343 }
  0x57   : > { %v171_v16 = vmul.f32 %v372_v8, %v170_v12 }
  0x5f   : > { %v374_v17 = vpop.eup %373 }
  0x60   : > { %v168_v19 = vmul.f32 0.6931472, %v374_v17 }
  0x62   : > { %v174_v21 = vsel %vm173_vm0, %v171_v16, %v168_v19 }
  0x63   : > { %v175_v22 = vadd.f32 %v174_v21, %v161_v18 }
  0x65   : > { %v180_v23 = vmul.f32 %v179_v20, %v175_v22 }
  0x67   : > { %187 = vadd.xlane.f32.xlu0 %v180_v23 }
  0xf4   : > { %v188_v24 = vpop.xlane.xlu0 %187 }
  0xf5   : > { %v189_v25 = vrot.slane %v188_v24, 4 }
  0xf7   : > { %v190_v26 = vadd.f32 %v189_v25, %v188_v24 }
  0xf9   : > { %v191_v27 = vrot.slane %v190_v26, 2 }
  0xfb   : > { %v192_v28 = vadd.f32 %v191_v27, %v190_v26 }
  0xfd   : > { %v193_v29 = vrot.slane %v192_v28, 1 }
  0xff   : > { %v194_v30 = vadd.f32 %v193_v29, %v192_v28 }
 0x101   : > { %304 = vpush %v194_v30 }
 0x132   : > { %s305_s2 = spop %304 }
 0x133   : > { %v196_v31 = vstv %s305_s2 }
 0x134   : > { %197 = vst [vmem:[%s148_s25] sm:$0xff] %v196_v31 }
 0x135   : > { %418 = shalt.err (!%p415_p3)
}
 0x136   : > { %s419_s24 = scalar_lea.hbm %s629_s15, 128  ;;  %s423_s29 = scalar_lea.hbm %s677_s1, 256 }
 0x137   : > { %p420_p5 = scmp.ne.s32.totalorder %s629_s15, %s419_s24  ;;  %p424_p12 = scmp.lt.u32.totalorder %s629_s15, %s677_s1 }
 0x138   : > { %p425_p2 = scmp.lt.u32.totalorder %s423_s29, %s419_s24  ;;  %p427_p8 = scmp.lt.u32.totalorder %s419_s24, %s629_s15 }
 0x139   : > { %p421_p6 = pnand %p420_p5, %p684_p9 }
 0x13a   : > { %p426_p4 = por %p425_p2, %p424_p12 }
 0x13b   : > { %p422_p7 = pneg %p421_p6 }
 0x13c   : > { %p428_p11 = por %p427_p8, %p426_p4 }
 0x13e   : > { %p429_p0 = pnand %p428_p11, %p422_p7 }
 0x140   : > { %432 = shalt.err (!%p429_p0)
}
 0x141   : > { %308 = dma.vmem_to_hbm [thread:$0]  (%p684_p9), %s624_s28, 128, %s629_s15, %s199_s16  }
 0x142 PF: > { %s224_s5 = sand.u32 1, %s467_s6   ;;  %p685_p10 = scmp.ne.s32.totalorder %s682_s21, 0 }
 0x143   : > { %p686_p13 = scmp.ge.s32.totalorder %s487_s11, 2  ;;  %s225_s18 = scalar_lea.sflag [#allocation5], %s224_s5 }
 0x145   : > { %p315_p1 = pnand %p686_p13, %p685_p10 }
 0x147   : > { %462 = dma.done.wait (!%p315_p1), %s225_s18, 128  }
 0x148   : > { %464 = vsyncadd (!%p315_p1), %s225_s18, 4294967168  ;;  %s17_s11 = sadd.s32 1, %s487_s11   ;;  %s687_s6 = smov %s471_s7 }
 0x149   : > { %p14_p3 = scmp.ge.s32.totalorder %s17_s11, 4   ;;  %s688_s7 = smov %s475_s8 }
 0x14a   : > { %s689_s8 = smov %s560_s20  ;;  %s690_s9 = smov %s483_s10 }
 0x14b   : > { %s691_s10 = smov %s693_s14  ;;  %16 = sbr.rel (!%p14_p3) target bundleno = 6 (0x6), region = 77 }
 0x152   :  { %230 = vsyncpa [#allocation4], 1 }
 0x153   :  { %232 = vsyncpa [#allocation4 + $0x1], 1 }
 0x154   :  { %233 = vsyncpa [#allocation5], 1 }
 0x155   :  { %235 = vsyncpa [#allocation5 + $0x1], 1 }

</bundles_post_ra>
